<compile_context>
chip_gen: v6e
topology: v6e:2x2x1
jax: 0.10.0
libtpu: 0.0.40
codegen_flags: <defaults>
</compile_context>

<pallas_src>
import jax
import jax.numpy as jnp
from jax import lax
from jax.experimental import pallas as pl
from jax.experimental.pallas import tpu as pltpu


def _make_residual_kernel(L, T, nwin, D, has_bias):
    """Kernel over one batch tile: x block (TB, T, D) -> residual block (TB, nwin*D)."""
    C = (L + 1) * D  # W_cat columns: L lag blocks + one -I block

    def kernel(x_ref, w_ref, *rest):
        if has_bias:
            b_ref, out_ref = rest
        else:
            (out_ref,) = rest

        tb = x_ref.shape[0]

        # One big MXU matmul over every row of the batch tile:
        #   (TB, T, D) x (D, (L+1)*D) -> (TB, T, (L+1)*D), f32 accumulation.
        y = lax.dot_general(
            x_ref[...], w_ref[...],
            dimension_numbers=(((2,), (0,)), ((), ())),
            preferred_element_type=jnp.float32,
        )

        # Lag sum via (L+1) statically shifted slices of the matmul output.
        # Column group l holds x @ W[l] for l < L and x @ (-I) for l == L,
        # so the final group subtracts x[t+L] with no extra VPU op.
        acc = y[:, 0:nwin, 0:D]
        for l in range(1, L + 1):
            acc = acc + y[:, l:l + nwin, l * D:(l + 1) * D]

        if has_bias:
            # Single broadcast/add per grid step (hoisted out of any loop).
            acc = acc + b_ref[...].astype(jnp.float32)

        # Lane-dense store: merge (nwin, D) -> nwin*D along the lane axis.
        out_ref[...] = acc.reshape(tb, nwin * D).astype(out_ref.dtype)

    return kernel


def _pick_batch_tile(B, T, D, nwin, L, itemsize, vmem_budget_bytes):
    """Largest valid batch tile whose per-step VMEM footprint fits the budget.

    Valid tiles are divisors of B that are either B itself or a multiple of 8
    (the lane-dense 2-D output block puts TB in the sublane position).  We
    prefer >= 2 grid steps so v7x's two TensorCores both get work, as long as
    that does not shrink the tile below half of the largest fitting one.
    """
    # Per-batch-row bytes: double-buffered x + out blocks (itemsize) plus f32
    # in-kernel intermediates (y = (L+1)*T*D, acc + reshaped store ~ 2*nwin*D).
    per_row = itemsize * D * 2 * (T + nwin) + 4 * D * ((L + 1) * T + 2 * nwin)
    fixed = 2 * 4 * D * (L + 1) * D + 4 * D  # W_cat (double-buffered) + bias
    cap = max(1, (vmem_budget_bytes - fixed) // per_row)

    valid = [d for d in range(1, B + 1) if B % d == 0 and (d == B or d % 8 == 0)]
    fitting = [d for d in valid if d <= cap]
    if not fitting:
        # Degenerate shapes (no multiple-of-8 divisor fits the budget): fall
        # back to the smallest valid tile; correctness is preserved.
        return min(valid)
    multi = [d for d in fitting if B // d >= 2]
    if multi and 2 * max(multi) >= max(fitting):
        return max(multi)
    return max(fitting)


# Tile-picking target; comfortably below v7x's 64 MiB physical VMEM.
_VMEM_BUDGET_BYTES = 40 * 1024 * 1024
_VMEM_LIMIT_BYTES = 48 * 1024 * 1024


def mbd_transition_prior_forward(x, W, b=None):
    """Pallas implementation of MBDTransitionPrior.forward.

    Args:
      x: (B, T, D) float32
      W: (L, D, D) float32  -- GroupLinearLayer weights (one D x D per lag)
      b: optional (1, D) float32 bias
    Returns:
      residuals: (B, T - L, D)
      log_abs_det_jacobian: (B,)
    """
    B, T, D = x.shape
    L = W.shape[0]
    nwin = T - L
    assert nwin > 0, "sequence length must exceed the number of lags"
    has_bias = b is not None

    itemsize = jnp.dtype(x.dtype).itemsize
    TB = _pick_batch_tile(B, T, D, nwin, L, itemsize, _VMEM_BUDGET_BYTES)
    grid = (B // TB,)

    # Fold the "- x[t+L]" term into the matmul: W_ext = [W_0 ... W_{L-1}, -I],
    # then lay the lag blocks out side-by-side: W_cat (D, (L+1)*D) with
    # W_cat[:, l*D:(l+1)*D] = W_ext[l].
    W_ext = jnp.concatenate([W, -jnp.eye(D, dtype=W.dtype)[None]], axis=0)
    W_cat = jnp.transpose(W_ext, (1, 0, 2)).reshape(D, (L + 1) * D)

    kernel = _make_residual_kernel(L, T, nwin, D, has_bias)

    in_specs = [
        # x: one batch tile per grid step, full time/feature extent (DMA'd once).
        pl.BlockSpec((TB, T, D), lambda i: (i, 0, 0)),
        # W_cat: pinned (same block every step).
        pl.BlockSpec((D, (L + 1) * D), lambda i: (0, 0)),
    ]
    operands = [x, W_cat]
    if has_bias:
        in_specs.append(pl.BlockSpec((1, D), lambda i: (0, 0)))
        operands.append(b)

    bias_elems = b.size if has_bias else 0
    cost = pl.CostEstimate(
        flops=2 * B * T * D * (L + 1) * D,
        transcendentals=0,
        bytes_accessed=(x.size + W_cat.size + bias_elems + B * nwin * D) * itemsize,
    )

    residuals_flat = pl.pallas_call(
        kernel,
        # Lane-dense output: last dim is nwin*D (full extent), reshaped back
        # to (B, nwin, D) below (free metadata op).
        out_shape=jax.ShapeDtypeStruct((B, nwin * D), x.dtype),
        grid=grid,
        in_specs=in_specs,
        out_specs=pl.BlockSpec((TB, nwin * D), lambda i: (i, 0)),
        compiler_params=pltpu.CompilerParams(
            dimension_semantics=("parallel",),  # batch tiles are independent
            vmem_limit_bytes=_VMEM_LIMIT_BYTES,
        ),
        cost_estimate=cost,
    )(*operands)

    residuals = residuals_flat.reshape(B, nwin, D)
    log_abs_det_jacobian = jnp.zeros((B,), dtype=x.dtype)
    return residuals, log_abs_det_jacobian


def _reference(x, W, b=None):
    """Pure-JAX reference mirroring the PyTorch code path."""
    B, T, D = x.shape
    L = W.shape[0]
    nwin = T - L
    idx = jnp.arange(nwin)[:, None] + jnp.arange(L + 1)[None, :]
    xw = x[:, idx, :]                        # (B, nwin, L+1, D)
    yy = xw[:, :, :L, :].reshape(-1, L, D)   # (N, L, D)
    xx = xw[:, :, L, :].reshape(-1, D)       # (N, D)
    trans = jnp.einsum("nld,lde->ne", yy, W)
    if b is not None:
        trans = trans + b
    res = (trans - xx).reshape(B, nwin, D)
    return res, jnp.zeros((B,), x.dtype)


if __name__ == "__main__":
    # Module config: lags=2, latent_size=32 (bias exercised both ways below).
    lags, latent_size = 2, 32
    batch, length = 2, 8

    key = jax.random.PRNGKey(0)
    kx, kw = jax.random.split(key)
    x = jax.random.normal(kx, (batch, length, latent_size), dtype=jnp.float32)
    # GroupLinearLayer init: 0.01 * randn(num_blocks, din, dout), deterministic here.
    W = 0.01 * jax.random.normal(
        kw, (lags, latent_size, latent_size), dtype=jnp.float32
    )

    # --- bias=False (module default) ---
    residuals, logdet = mbd_transition_prior_forward(x, W, b=None)
    jax.block_until_ready(residuals)
    jax.block_until_ready(logdet)

    res_ref, logdet_ref = _reference(x, W, b=None)
    assert residuals.shape == (batch, length - lags, latent_size)
    assert logdet.shape == (batch,)
    assert jnp.allclose(residuals, res_ref, atol=1e-5, rtol=1e-5)
    assert jnp.allclose(logdet, logdet_ref)

    # --- bias=True path (nn.Parameter(0.001 * randn(1, latent_size))) ---
    bvec = 0.001 * jax.random.normal(
        jax.random.PRNGKey(1), (1, latent_size), dtype=jnp.float32
    )
    res_b, _ = mbd_transition_prior_forward(x, W, b=bvec)
    jax.block_until_ready(res_b)
    res_b_ref, _ = _reference(x, W, b=bvec)
    assert jnp.allclose(res_b, res_b_ref, atol=1e-5, rtol=1e-5)

    print("KERNEL_OK")
</pallas_src>

<mosaic_0001>
module attributes {stable_mosaic.version = 11 : i64} {
  func.func @kernel(%arg0: i32, %arg1: memref<2x8x32xf32, #tpu.memory_space<vmem>>, %arg2: memref<32x96xf32, #tpu.memory_space<vmem>>, %arg3: memref<2x192xf32, #tpu.memory_space<vmem>>) attributes {dimension_semantics = [#tpu.dimension_semantics<parallel>], iteration_bounds = array<i64: 1>, scalar_prefetch = 0 : i64, scratch_operands = 0 : i64, tpu.core_type = #tpu.core_type<tc>, window_params = [{transform_indices = @transform_0, window_bounds = array<i64: 2, 8, 32>}, {pipeline_mode = #tpu.pipeline_mode<synchronous>, transform_indices = @transform_1, window_bounds = array<i64: 32, 96>}, {transform_indices = @transform_2, window_bounds = array<i64: 2, 192>}]} {
    %c0 = arith.constant 0 : index
    %c0_0 = arith.constant 0 : index
    %c0_1 = arith.constant 0 : index
    %0 = vector.load %arg1[%c0, %c0_0, %c0_1] : memref<2x8x32xf32, #tpu.memory_space<vmem>>, vector<2x8x32xf32>
    %c0_2 = arith.constant 0 : index
    %c0_3 = arith.constant 0 : index
    %1 = vector.load %arg2[%c0_2, %c0_3] : memref<32x96xf32, #tpu.memory_space<vmem>>, vector<32x96xf32>
    %cst = arith.constant dense<0.000000e+00> : vector<2x8x96xf32>
    %2 = tpu.matmul %0, %1, %cst {dimension_numbers = #tpu.dot_dimension_numbers<[2], [0], [0, 1], [1], [0, 0, 0, 1, 1, 1], [], []>} : vector<2x8x32xf32>, vector<32x96xf32>, vector<2x8x96xf32> -> vector<2x8x96xf32>
    %3 = vector.extract_strided_slice %2 {offsets = [0, 0, 0], sizes = [2, 6, 32], strides = [1, 1, 1]} : vector<2x8x96xf32> to vector<2x6x32xf32>
    %4 = vector.extract_strided_slice %2 {offsets = [0, 1, 32], sizes = [2, 6, 32], strides = [1, 1, 1]} : vector<2x8x96xf32> to vector<2x6x32xf32>
    %5 = arith.addf %3, %4 : vector<2x6x32xf32>
    %6 = vector.extract_strided_slice %2 {offsets = [0, 2, 64], sizes = [2, 6, 32], strides = [1, 1, 1]} : vector<2x8x96xf32> to vector<2x6x32xf32>
    %7 = arith.addf %5, %6 : vector<2x6x32xf32>
    %8 = vector.shape_cast %7 : vector<2x6x32xf32> to vector<2x192xf32>
    %c0_4 = arith.constant 0 : index
    %c0_5 = arith.constant 0 : index
    %9 = vector.load %arg3[%c0_4, %c0_5] : memref<2x192xf32, #tpu.memory_space<vmem>>, vector<2x192xf32>
    tpu.vector_store %arg3[%c0_4, %c0_5], %8 {strides = array<i32>} : memref<2x192xf32, #tpu.memory_space<vmem>>, vector<2x192xf32>,
    return
  }
  func.func @transform_0(%arg0: i32) -> (i32, i32, i32) {
    %c0_i32 = arith.constant 0 : i32
    %c0_i32_0 = arith.constant 0 : i32
    %c0_i32_1 = arith.constant 0 : i32
    return %arg0, %c0_i32, %c0_i32_0 : i32, i32, i32
  }
  func.func @transform_1(%arg0: i32) -> (i32, i32) {
    %c0_i32 = arith.constant 0 : i32
    %c0_i32_0 = arith.constant 0 : i32
    %c0_i32_1 = arith.constant 0 : i32
    return %c0_i32, %c0_i32_0 : i32, i32
  }
  func.func @transform_2(%arg0: i32) -> (i32, i32) {
    %c0_i32 = arith.constant 0 : i32
    %c0_i32_0 = arith.constant 0 : i32
    return %arg0, %c0_i32 : i32, i32
  }
}

</mosaic_0001>

<bundles_post_ra>
// kernel: tpu_custom_call.1
= control target key start
LH: loop header
LB: loop body
LE: loop exit
PB: predicated region body
PF: predicated region fallthrough
CT: control target
= control target key end

     0   :  { %7 = vsyncpa [#allocation3], 0  ;;  %s388_s0 = inlined_call_operand.hbm [shape: f32[2,8,32], index: 0, kind: input, shape index: {}]   ;;  %s389_s1 = inlined_call_operand.hbm [shape: f32[32,96], index: 1, kind: input, shape index: {}]   ;;  %s390_s2 = inlined_call_operand.hbm [shape: f32[2,192], index: 2, kind: output, shape index: {}]  }
   0x1   :  { %8 = vsyncpa [#allocation6], 0 }
   0x2   :  { %9 = vsyncpa [#allocation4], 0  ;;  %s343_s9 = smov [#allocation2]  }
   0x3   :  { %s15_s10 = sshll.u32 %s343_s9, 4  ;;  %s16_s10 = int_to_ptr.vmem [resolvable:$true] %s15_s10 }
   0x4   :  { %s285_s11 = scalar_lea.vmem %s16_s10, 256  ;;  %p290_p1 = scmp.lt.s32.totalorder %s16_s10, %s16_s10 }
   0x5   :  { %p286_p0 = scmp.ne.s32.totalorder %s16_s10, %s285_s11  ;;  %p291_p2 = scmp.lt.s32.totalorder %s285_s11, %s285_s11 }
   0x7   :  { %p292_p3 = por %p291_p2, %p290_p1 }
   0x9   :  { %p293_p4 = pnand %p292_p3, %p286_p0 }
   0xb   :  { %296 = shalt.err (!%p293_p4)
}
   0xc   :  { %s344_s12 = smov 128   ;;  %s345_s13 = smov 8  }
   0xd   :  { %21 = dma.hbm_to_vmem [thread:$0]  %s388_s0, 256, %s16_s10, [#allocation3], %s344_s12, %s344_s12, %s345_s13  }
   0xe   :  { %s346_s16 = smov [#allocation5]  }
   0xf   :  { %s27_s17 = sshll.u32 %s346_s16, 4  ;;  %s28_s17 = int_to_ptr.vmem [resolvable:$true] %s27_s17 }
  0x10   :  { %s305_s18 = scalar_lea.vmem %s28_s17, 512  ;;  %p310_p6 = scmp.lt.s32.totalorder %s28_s17, %s28_s17 }
  0x11   :  { %p306_p5 = scmp.ne.s32.totalorder %s28_s17, %s305_s18  ;;  %p311_p7 = scmp.lt.s32.totalorder %s305_s18, %s305_s18 }
  0x13   :  { %p312_p8 = por %p311_p7, %p310_p6 }
  0x15   :  { %p313_p9 = pnand %p312_p8, %p306_p5 }
  0x17   :  { %316 = shalt.err (!%p313_p9)
}
  0x18   :  { %33 = dma.hbm_to_vmem [thread:$0]  %s389_s1, 512, %s28_s17, [#allocation6], %s344_s12, %s344_s12, %s345_s13  }
  0x19   :  { %337 = dma.done.wait [#allocation3], 256  }
  0x1a   :  { %338 = vsyncadd [#allocation3], 4294967040 }
  0x1b   :  { %339 = dma.done.wait [#allocation6], 512  }
  0x1c   :  { %340 = vsyncadd [#allocation6], 4294966784  ;;  %vm46_vm0 = vcmask 261120   ;;  %v45_v0 = vld [vmem:[#allocation5 + $0x18] sm:$0xff]  ;;  %v44_v1 = vld [vmem:[#allocation5 + $0x10] sm:$0xff]  ;;  %s347_s0 = smov 64   ;;  %v153_v14 = vlaneseq }
  0x1d   :  { %255 = vmatprep.subr.mxu0 %v45_v0  ;;  %v40_v2 = vld [vmem:[#allocation2] sm:$0xff]  ;;  %v43_v3 = vld [vmem:[#allocation5 + $0x8] sm:$0xff]  ;;  %v42_v4 = vld [vmem:[#allocation5] sm:$0xff]  ;;  %s348_s1 = smov 96   ;;  %v349_v12 = vmov 1983009808  }
  0x1e   :  { %256 = vmatpush3.msra.mxu0 %v45_v0  ;;  %263 = vmatprep.mubr.msk.f32.mxu0 %vm46_vm0, %v40_v2  ;;  %v41_v5 = vld [vmem:[#allocation2 + $0x8] sm:$0xff]  ;;  %v151_v13 = vunpack.c.l.s4 %v349_v12  ;;  %v154_v18 = vshrl.u32 %v153_v14, 7  ;;  %v350_v20 = vmov 1934713408   ;;  %v351_v38 = vmov 0.0   ;;  %s352_s21 = smov 32  }
  0x1f   :  { %257 = vmatprep.subr.mxu0 %v44_v1  ;;  %v169_v21 = vunpack.c.l.s4 %v350_v20  ;;  %vm210_vm1 = vcmask 523264   ;;  %vm212_vm2 = vcmask 785408   ;;  %vm226_vm3 = vcmask 1041408   ;;  %s353_s22 = smov [#allocation7]  }
  0x20   :  { %258 = vmatpush3.msra.mxu0 %v44_v1  ;;  %v152_v17 = vunpack.c.0.s8 %v151_v13  ;;  %vm227_vm4 = vcmask 519170   ;;  %s236_s23 = sshll.u32 %s353_s22, 4  ;;  %s237_s23 = int_to_ptr.vmem [resolvable:$true] %s236_s23 }
  0x21   :  { %259 = vmatprep.subr.mxu0 %v43_v3  ;;  %v170_v26 = vunpack.c.0.s8 %v169_v21  ;;  %vm228_vm5 = vmor %vm227_vm4, %vm226_vm3  ;;  %s317_s24 = scalar_lea.vmem %s237_s23, 64  ;;  %p322_p11 = scmp.lt.s32.totalorder %s237_s23, %s237_s23 }
  0x22   :  { %260 = vmatpush3.msra.mxu0 %v43_v3  ;;  %v155_v23 = vsub.s32 %v152_v17, %v154_v18  ;;  %p318_p10 = scmp.ne.s32.totalorder %s237_s23, %s317_s24  ;;  %p323_p12 = scmp.lt.s32.totalorder %s317_s24, %s317_s24 }
  0x23   :  { %261 = vmatprep.subr.mxu0 %v42_v4  ;;  %v173_v32 = vsub.s32 %v170_v26, %v154_v18 }
  0x24   :  { %262 = vmatpush3.msra.mxu0 %v42_v4  ;;  %p324_p13 = por %p323_p12, %p322_p11 }
  0x25   :  { %264 = vmatmul.mubr.msk.f32.vlgmr.msra.gmra.mxu0 %vm46_vm0, %v41_v5 }
  0x26   :  { %p325_p0 = pnand %p324_p13, %p318_p10 }
  0xe5   :  { %v265_v6 = vpop.f32.mrf.mxu0 }
  0xe6   :  { %v131_v10 = vrot.slane %v265_v6, 1  ;;  %v141_v11 = vrot.slane %v265_v6, 2 }
  0xe7   :  { %v119_v7 = vpop.f32.mrf.mxu0 }
  0xe8   :  { %v140_v8 = vrot.slane %v119_v7, 2  ;;  %v130_v9 = vrot.slane %v119_v7, 1 }
  0xea   :  { %142 = vrot.lane.b32.xlu1 %v140_v8, %s347_s0  ;;  %132 = vrot.lane.b32.xlu0 %v130_v9, %s348_s1 }
  0xee   :  { %144 = vrot.lane.b32.xlu1 %v141_v11, %s347_s0  ;;  %134 = vrot.lane.b32.xlu0 %v131_v10, %s348_s1 }
 0x15c   :  { %v143_v15 = vpop.permute.xlu1 %142  ;;  %v133_v16 = vpop.permute.xlu0 %132 }
 0x15d   :  { %v138_v19 = vadd.f32 %v133_v16, %v119_v7 }
 0x15f   :  { %v148_v24 = vadd.f32 %v143_v15, %v138_v19 }
 0x160   :  { %v135_v22 = vpop.permute.xlu0 %134  ;;  %v145_v27 = vpop.permute.xlu1 %144 }
 0x161   :  { %v139_v25 = vadd.f32 %v265_v6, %v135_v22  ;;  %v156_v29 = vrot.slane %v148_v24, %v155_v23 }
 0x163   :  { %v149_v28 = vadd.f32 %v145_v27, %v139_v25 }
 0x165   :  { %v164_v30 = vrot.slane %v149_v28, %v155_v23  ;;  %v248_v31 = vcombine.high %v148_v24, %v149_v28 }
 0x167   :  { %v166_v33 = vcombine.low %v156_v29, %v164_v30  ;;  %v167_v34 = vcombine.high %v156_v29, %v164_v30  ;;  %v189_v37 = vrot.slane %v248_v31, %v173_v32 }
 0x169   :  { %v181_v35 = vrot.slane %v167_v34, %v173_v32  ;;  %v174_v36 = vrot.slane %v166_v33, %v173_v32  ;;  %v192_v40 = vcombine.high %v189_v37, %v351_v38 }
 0x16b   :  { %198 = vrot.lane.b32.xlu1 %v181_v35, %s347_s0  ;;  %v190_v39 = vcombine.high %v174_v36, %v351_v38  ;;  %v191_v41 = vcombine.high %v181_v35, %v351_v38 }
 0x16d   :  { %194 = vrot.lane.b32.xlu0 %v190_v39, %s352_s21 }
 0x16f   :  { %206 = vrot.lane.b32.xlu1 %v192_v40, %s352_s21 }
 0x171   :  { %202 = vrot.lane.b32.xlu0 %v191_v41, %s348_s1 }
 0x1dd   :  { %v199_v42 = vpop.permute.xlu1 %198 }
 0x1df   :  { %v195_v43 = vpop.permute.xlu0 %194 }
 0x1e0   :  { %v209_v44 = vsel %vm46_vm0, %v174_v36, %v195_v43 }
 0x1e1   :  { %v207_v45 = vpop.permute.xlu1 %206  ;;  %v211_v46 = vsel %vm210_vm1, %v209_v44, %v199_v42 }
 0x1e2   :  { %v214_v48 = vsel %vm46_vm0, %v189_v37, %v207_v45 }
 0x1e3   :  { %v203_v47 = vpop.permute.xlu0 %202 }
 0x1e4   :  { %v213_v49 = vsel %vm212_vm2, %v211_v46, %v203_v47 }
 0x1e5   :  { %v217_v50 = vcombine.low %v213_v49, %v214_v48 }
 0x1e7   :  { %v224_v51 = vrot.slane %v217_v50, %v155_v23 }
 0x1e9   :  { %229 = vst.msk [vmem:[#allocation7] sm:$0xf] %vm228_vm5, %v224_v51 }
 0x1ea   :  { %328 = shalt.err (!%p325_p0)
}
 0x1eb   :  { %239 = dma.vmem_to_hbm [thread:$0]  %s237_s23, 64, %s390_s2, [#allocation4]  }
 0x1ec   :  { %341 = dma.done.wait [#allocation4], 64  }
 0x1ed   :  { %342 = vsyncadd [#allocation4], 4294967232 }
 0x1ee   :  { %243 = vsyncpa [#allocation3], 1 }
 0x1ef   :  { %244 = vsyncpa [#allocation6], 1 }
 0x1f0   :  { %245 = vsyncpa [#allocation4], 1 }

</bundles_post_ra>
